<compile_context>
chip_gen: v5e
topology: v5e:2x2
jax: 0.10.0
libtpu: 0.0.40
codegen_flags: <defaults>
</compile_context>

<pallas_src>
import jax
import jax.numpy as jnp
from jax import lax
from jax.experimental import pallas as pl
from jax.experimental.pallas import tpu as pltpu

KSIZE = 7
PAD = (KSIZE - 1) // 2  # 3


def make_attention_kernel(n_batch):
    """Kernel body for one channel block.

    Block shapes: x/o (N, Cb, HW) f32, M (2*HW, HW) bf16, b SMEM (1,) f32."""
    inv_n = 1.0 / float(n_batch)

    def kernel(b_ref, m_ref, x_ref, o_ref):
        x = x_ref[...].astype(jnp.float32)                    # (N, Cb, HW)

        # ZPool over the batch axis (axis 0 -> pure vreg-wise reductions, no XLU).
        xmax = jnp.max(x, axis=0)                             # (Cb, HW)
        xmean = jnp.sum(x, axis=0) * inv_n                    # (Cb, HW)

        # 7x7 "same" conv (2 -> 1 ch) + BN scale: one fused bf16 MXU matmul, K = 2*HW.
        pooled = jnp.concatenate([xmax, xmean], axis=-1).astype(jnp.bfloat16)  # (Cb, 2*HW)
        y = jnp.dot(pooled, m_ref[...],
                    preferred_element_type=jnp.float32) + b_ref[0]             # (Cb, HW)

        scale = jax.nn.sigmoid(y)                             # f32 (EUP)
        o_ref[...] = (x * scale[None, :, :]).astype(o_ref.dtype)

    return kernel


def build_conv_matrix(conv_w, bn_gamma, bn_beta, bn_mean, bn_var, H, W, eps=1e-5):
    """Fold the 7x7 cross-correlation (zero 'same' padding) and eval-mode BN scale into a
    single banded matrix M of shape (2*HW, HW) plus a scalar bias b:

        y[ho*W+wo] = sum_k pooled_concat[k] * M[k, ho*W+wo] + b,
        k = ic*HW + hi*W + wi,  pooled_concat = [xmax | xmean] along the lane axis.
    """
    a = bn_gamma / jnp.sqrt(bn_var + eps)                     # (1,)
    b = (bn_beta - a * bn_mean).astype(jnp.float32)           # (1,)

    w = conv_w[0].astype(jnp.float32)                         # (2, 7, 7)
    kh = jnp.arange(H)[:, None] - jnp.arange(H)[None, :] + PAD   # (H_in, H_out)
    kw = jnp.arange(W)[:, None] - jnp.arange(W)[None, :] + PAD   # (W_in, W_out)
    vh = (kh >= 0) & (kh < KSIZE)
    vw = (kw >= 0) & (kw < KSIZE)
    khc = jnp.clip(kh, 0, KSIZE - 1)
    kwc = jnp.clip(kw, 0, KSIZE - 1)

    # lut[ic, hi, wi, ho, wo] = w[ic, hi-ho+PAD, wi-wo+PAD]
    lut = w[:, khc[:, None, :, None], kwc[None, :, None, :]]       # (2, H, W, H, W)
    mask = (vh[:, None, :, None] & vw[None, :, None, :]).astype(jnp.float32)
    M = lut * mask[None] * a[0]                                    # fold BN scale
    M = M.reshape(2 * H * W, H * W).astype(jnp.bfloat16)           # single fused K = 2*HW
    return M, b


def _tpu_config():
    """Generation-aware VMEM budget / MXU-fill preferences."""
    kind = ""
    try:
        kind = jax.devices()[0].device_kind.lower()
    except Exception:
        pass
    if "v7" in kind:    # 64 MiB physical VMEM, 2 TCs/chip, 256-wide MXU
        return dict(vmem_limit=48 << 20, vmem_cap=56 << 20, prefer_cb=256, want_multi_step=True)
    if "v6" in kind:    # 128 MiB physical VMEM, 256-wide MXU
        return dict(vmem_limit=96 << 20, vmem_cap=112 << 20, prefer_cb=256, want_multi_step=False)
    if "v5" in kind:    # 128 MiB physical VMEM, 128-wide MXU (v5e) -> Cb multiples of 128 suffice
        return dict(vmem_limit=96 << 20, vmem_cap=112 << 20, prefer_cb=128, want_multi_step=False)
    # Unknown chip: conservative defaults known to compile everywhere.
    return dict(vmem_limit=32 << 20, vmem_cap=64 << 20, prefer_cb=128, want_multi_step=False)


def _pick_channel_block(C, N, HW, itemsize, vmem_budget_bytes, prefer_cb, want_multi_step):
    """Pick the channel block Cb.

    Constraints:
      * (Cb, HW) is the trailing block tile, so Cb must be a multiple of 8 or equal C
        (whole sublanes -> unmasked stores; full extent is always legal).
      * Double-buffered in + out (N, Cb, HW) blocks must fit the VMEM budget.
    Preferences (per perf review):
      * Cb large enough to fill the MXU rows (prefer_cb = 128 / 256 by generation).
      * On v7x, >= 2 grid steps (only when C >= 16) so both TensorCores get work.
    """
    bytes_per_channel = 4 * N * HW * itemsize            # in + out, double-buffered
    max_cb = max(int(vmem_budget_bytes // max(bytes_per_channel, 1)), 1)

    if C < 8:
        return C                                          # full extent is the only legal choice
    want_split = want_multi_step and C >= 16
    if C <= max_cb and not want_split:
        return C                                          # single step, full-extent block

    cb = min(max_cb, prefer_cb, C)
    if want_split:
        cb = min(cb, C // 2)
    cb = max((cb // 8) * 8, 8)                            # whole sublanes
    return cb


def self_aware_augmented(x, conv_w, bn_gamma, bn_beta, bn_mean, bn_var,
                         eps=1e-5, channels_per_block=None, donate_x=False):
    """Pallas forward. x: (N, C, H, W) f32 (NCHW, like PyTorch)."""
    N, C, H, W = x.shape
    HW = H * W

    # Free reshape (merges contiguous trailing dims) -> lane-dense trailing extent HW.
    x_flat = x.reshape(N, C, HW)

    M, b = build_conv_matrix(conv_w, bn_gamma, bn_beta, bn_mean, bn_var, H, W, eps)

    cfg = _tpu_config()
    itemsize = jnp.dtype(x.dtype).itemsize
    m_bytes = M.size * jnp.dtype(M.dtype).itemsize
    slack = 2 << 20

    if channels_per_block is None:
        budget = max(cfg["vmem_limit"] - m_bytes - slack, 1 << 20)
        cb = _pick_channel_block(C, N, HW, itemsize, budget,
                                 cfg["prefer_cb"], cfg["want_multi_step"])
    else:
        cb = channels_per_block

    # Ensure the scoped limit actually covers the chosen blocks (single-buffered M +
    # double-buffered in/out blocks), capped at a generation-safe ceiling.
    needed = m_bytes + 4 * N * cb * HW * itemsize + slack
    vmem_limit = int(min(max(cfg["vmem_limit"], needed), cfg["vmem_cap"]))

    grid = (pl.cdiv(C, cb),)
    kernel = make_attention_kernel(N)
    aliases = {2: 0} if donate_x else {}

    def build_call(single_buffer_m):
        if single_buffer_m:
            # Constant index_map -> fetched once; single buffer frees 2*HW*HW*2 bytes of VMEM.
            m_spec = pl.BlockSpec((2 * HW, HW), lambda c: (0, 0),
                                  pipeline_mode=pl.Buffered(1))
        else:
            m_spec = pl.BlockSpec((2 * HW, HW), lambda c: (0, 0))
        return pl.pallas_call(
            kernel,
            out_shape=jax.ShapeDtypeStruct((N, C, HW), x.dtype),
            grid=grid,
            in_specs=[
                pl.BlockSpec(memory_space=pltpu.MemorySpace.SMEM),   # folded BN bias (scalar)
                m_spec,                                              # resident fused conv matrix
                pl.BlockSpec((N, cb, HW), lambda c: (0, c, 0)),      # x block (NCHW, HW flat)
            ],
            out_specs=pl.BlockSpec((N, cb, HW), lambda c: (0, c, 0)),
            compiler_params=pltpu.CompilerParams(
                dimension_semantics=("parallel",),
                vmem_limit_bytes=vmem_limit),
            input_output_aliases=aliases,
        )

    try:
        out_flat = build_call(single_buffer_m=True)(b, M, x_flat)
    except Exception:
        # Fallback if this jax build rejects per-BlockSpec pipeline_mode / Buffered(1).
        out_flat = build_call(single_buffer_m=False)(b, M, x_flat)

    return out_flat.reshape(N, C, H, W)


def reference(x, conv_w, bn_gamma, bn_beta, bn_mean, bn_var, eps=1e-5):
    """Pure-JAX reference of the PyTorch forward (eval-mode BN), full precision."""
    x_perm = jnp.transpose(x, (1, 0, 2, 3))           # (C, N, H, W)
    xmax = jnp.max(x_perm, axis=1, keepdims=True)
    xmean = jnp.mean(x_perm, axis=1, keepdims=True)
    xc = jnp.concatenate([xmax, xmean], axis=1)       # (C, 2, H, W)
    y = lax.conv_general_dilated(
        xc, conv_w, window_strides=(1, 1),
        padding=((PAD, PAD), (PAD, PAD)),
        dimension_numbers=("NCHW", "OIHW", "NCHW"),
        precision=lax.Precision.HIGHEST)              # (C, 1, H, W)
    a = bn_gamma / jnp.sqrt(bn_var + eps)
    b = bn_beta - a * bn_mean
    y = a.reshape(1, -1, 1, 1) * y + b.reshape(1, -1, 1, 1)
    scale = jax.nn.sigmoid(y)
    out_perm = x_perm * scale
    return jnp.transpose(out_perm, (1, 0, 2, 3))


if __name__ == "__main__":
    key = jax.random.PRNGKey(0)
    kx, kw = jax.random.split(key)

    # Small shapes consistent with the module: NCHW input.
    N, C, H, W = 2, 4, 16, 16
    x = jax.random.normal(kx, (N, C, H, W), dtype=jnp.float32)

    # Deterministic synthetic parameters.
    conv_w = 0.1 * jax.random.normal(kw, (1, 2, KSIZE, KSIZE), dtype=jnp.float32)
    bn_gamma = jnp.array([1.3], dtype=jnp.float32)
    bn_beta = jnp.array([-0.2], dtype=jnp.float32)
    bn_mean = jnp.array([0.1], dtype=jnp.float32)     # running_mean (eval mode)
    bn_var = jnp.array([0.9], dtype=jnp.float32)      # running_var  (eval mode)

    out = self_aware_augmented(x, conv_w, bn_gamma, bn_beta, bn_mean, bn_var)
    out = jax.block_until_ready(out)

    ref = jax.block_until_ready(
        reference(x, conv_w, bn_gamma, bn_beta, bn_mean, bn_var))

    assert out.shape == (N, C, H, W), out.shape
    # bf16 MXU operands vs. f32 HIGHEST reference -> tolerance ~1e-2.
    max_err = jnp.max(jnp.abs(out - ref))
    assert jnp.allclose(out, ref, rtol=2e-2, atol=2e-2), f"max abs err = {max_err}"

    print("KERNEL_OK")
</pallas_src>

<mosaic_0001>
module attributes {stable_mosaic.version = 11 : i64} {
  func.func @kernel(%arg0: i32, %arg1: memref<1xf32, #tpu.memory_space<smem>>, %arg2: memref<512x256xbf16, #tpu.memory_space<vmem>>, %arg3: memref<2x4x256xf32, #tpu.memory_space<vmem>>, %arg4: memref<2x4x256xf32, #tpu.memory_space<vmem>>) attributes {dimension_semantics = [#tpu.dimension_semantics<parallel>], iteration_bounds = array<i64: 1>, scalar_prefetch = 0 : i64, scratch_operands = 0 : i64, tpu.core_type = #tpu.core_type<tc>, window_params = [{transform_indices = @transform_0, window_bounds = array<i64: 1>}, {pipeline_mode = #tpu.pipeline_mode<synchronous>, transform_indices = @transform_1, window_bounds = array<i64: 512, 256>}, {transform_indices = @transform_2, window_bounds = array<i64: 2, 4, 256>}, {transform_indices = @transform_3, window_bounds = array<i64: 2, 4, 256>}]} {
    %c0 = arith.constant 0 : index
    %c0_0 = arith.constant 0 : index
    %c0_1 = arith.constant 0 : index
    %0 = vector.load %arg3[%c0, %c0_0, %c0_1] : memref<2x4x256xf32, #tpu.memory_space<vmem>>, vector<2x4x256xf32>
    %cst = arith.constant dense<0xFF800000> : vector<4x256xf32>
    %1 = vector.multi_reduction <maximumf>, %0, %cst [0] : vector<2x4x256xf32> to vector<4x256xf32>
    %cst_2 = arith.constant dense<0.000000e+00> : vector<4x256xf32>
    %2 = vector.multi_reduction <add>, %0, %cst_2 [0] : vector<2x4x256xf32> to vector<4x256xf32>
    %cst_3 = arith.constant 5.000000e-01 : f32
    %3 = vector.broadcast %cst_3 : f32 to vector<4x256xf32>
    %4 = arith.mulf %2, %3 : vector<4x256xf32>
    %5 = tpu.concatenate %1, %4 in 1 : vector<4x256xf32>, vector<4x256xf32> -> vector<4x512xf32>
    %6 = arith.truncf %5 : vector<4x512xf32> to vector<4x512xbf16>
    %c0_4 = arith.constant 0 : index
    %c0_5 = arith.constant 0 : index
    %7 = vector.load %arg2[%c0_4, %c0_5] : memref<512x256xbf16, #tpu.memory_space<vmem>>, vector<512x256xbf16>
    %cst_6 = arith.constant dense<0.000000e+00> : vector<4x256xf32>
    %8 = tpu.matmul %6, %7, %cst_6 {dimension_numbers = #tpu.dot_dimension_numbers<[1], [0], [0], [1], [0, 0, 1, 1], [], []>} : vector<4x512xbf16>, vector<512x256xbf16>, vector<4x256xf32> -> vector<4x256xf32>
    %c0_7 = arith.constant 0 : index
    %9 = memref.load %arg1[%c0_7] : memref<1xf32, #tpu.memory_space<smem>>
    %10 = vector.broadcast %9 : f32 to vector<4x256xf32>
    %11 = arith.addf %8, %10 : vector<4x256xf32>
    %12 = arith.negf %11 : vector<4x256xf32>
    %13 = math.exp %12 : vector<4x256xf32>
    %cst_8 = arith.constant 1.000000e+00 : f32
    %14 = vector.broadcast %cst_8 : f32 to vector<4x256xf32>
    %15 = arith.addf %14, %13 : vector<4x256xf32>
    %16 = arith.divf %14, %15 : vector<4x256xf32>
    %17 = vector.shape_cast %16 : vector<4x256xf32> to vector<1x4x256xf32>
    %18 = vector.broadcast %17 : vector<1x4x256xf32> to vector<2x4x256xf32>
    %19 = arith.mulf %0, %18 : vector<2x4x256xf32>
    %c0_9 = arith.constant 0 : index
    %c0_10 = arith.constant 0 : index
    %c0_11 = arith.constant 0 : index
    %20 = vector.load %arg4[%c0_9, %c0_10, %c0_11] : memref<2x4x256xf32, #tpu.memory_space<vmem>>, vector<2x4x256xf32>
    tpu.vector_store %arg4[%c0_9, %c0_10, %c0_11], %19 {strides = array<i32>} : memref<2x4x256xf32, #tpu.memory_space<vmem>>, vector<2x4x256xf32>,
    return
  }
  func.func @transform_0(%arg0: i32) -> i32 {
    %c0_i32 = arith.constant 0 : i32
    %c0_i32_0 = arith.constant 0 : i32
    return %c0_i32 : i32
  }
  func.func @transform_1(%arg0: i32) -> (i32, i32) {
    %c0_i32 = arith.constant 0 : i32
    %c0_i32_0 = arith.constant 0 : i32
    %c0_i32_1 = arith.constant 0 : i32
    return %c0_i32, %c0_i32_0 : i32, i32
  }
  func.func @transform_2(%arg0: i32) -> (i32, i32, i32) {
    %c0_i32 = arith.constant 0 : i32
    %c0_i32_0 = arith.constant 0 : i32
    %c0_i32_1 = arith.constant 0 : i32
    return %c0_i32, %arg0, %c0_i32_0 : i32, i32, i32
  }
  func.func @transform_3(%arg0: i32) -> (i32, i32, i32) {
    %c0_i32 = arith.constant 0 : i32
    %c0_i32_0 = arith.constant 0 : i32
    %c0_i32_1 = arith.constant 0 : i32
    return %c0_i32, %arg0, %c0_i32_0 : i32, i32, i32
  }
}

module attributes {stable_mosaic.version = 11 : i64} {
  func.func @kernel(%arg0: i32, %arg1: memref<1xf32, #tpu.memory_space<smem>>, %arg2: memref<512x256xbf16, #tpu.memory_space<vmem>>, %arg3: memref<2x4x256xf32, #tpu.memory_space<vmem>>, %arg4: memref<2x4x256xf32, #tpu.memory_space<vmem>>) attributes {dimension_semantics = [#tpu.dimension_semantics<parallel>], iteration_bounds = array<i64: 1>, scalar_prefetch = 0 : i64, scratch_operands = 0 : i64, tpu.core_type = #tpu.core_type<tc>, window_params = [{transform_indices = @transform_0, window_bounds = array<i64: 1>}, {pipeline_mode = #tpu.pipeline_mode<synchronous>, transform_indices = @transform_1, window_bounds = array<i64: 512, 256>}, {transform_indices = @transform_2, window_bounds = array<i64: 2, 4, 256>}, {transform_indices = @transform_3, window_bounds = array<i64: 2, 4, 256>}]} {
    %c0 = arith.constant 0 : index
    %c0_0 = arith.constant 0 : index
    %c0_1 = arith.constant 0 : index
    %0 = vector.load %arg3[%c0, %c0_0, %c0_1] : memref<2x4x256xf32, #tpu.memory_space<vmem>>, vector<2x4x256xf32>
    %cst = arith.constant dense<0xFF800000> : vector<4x256xf32>
    %1 = vector.multi_reduction <maximumf>, %0, %cst [0] : vector<2x4x256xf32> to vector<4x256xf32>
    %cst_2 = arith.constant dense<0.000000e+00> : vector<4x256xf32>
    %2 = vector.multi_reduction <add>, %0, %cst_2 [0] : vector<2x4x256xf32> to vector<4x256xf32>
    %cst_3 = arith.constant 5.000000e-01 : f32
    %3 = vector.broadcast %cst_3 : f32 to vector<4x256xf32>
    %4 = arith.mulf %2, %3 : vector<4x256xf32>
    %5 = tpu.concatenate %1, %4 in 1 : vector<4x256xf32>, vector<4x256xf32> -> vector<4x512xf32>
    %6 = arith.truncf %5 : vector<4x512xf32> to vector<4x512xbf16>
    %c0_4 = arith.constant 0 : index
    %c0_5 = arith.constant 0 : index
    %7 = vector.load %arg2[%c0_4, %c0_5] : memref<512x256xbf16, #tpu.memory_space<vmem>>, vector<512x256xbf16>
    %cst_6 = arith.constant dense<0.000000e+00> : vector<4x256xf32>
    %8 = tpu.matmul %6, %7, %cst_6 {dimension_numbers = #tpu.dot_dimension_numbers<[1], [0], [0], [1], [0, 0, 1, 1], [], []>} : vector<4x512xbf16>, vector<512x256xbf16>, vector<4x256xf32> -> vector<4x256xf32>
    %c0_7 = arith.constant 0 : index
    %9 = memref.load %arg1[%c0_7] : memref<1xf32, #tpu.memory_space<smem>>
    %10 = vector.broadcast %9 : f32 to vector<4x256xf32>
    %11 = arith.addf %8, %10 : vector<4x256xf32>
    %12 = arith.negf %11 : vector<4x256xf32>
    %13 = math.exp %12 : vector<4x256xf32>
    %cst_8 = arith.constant 1.000000e+00 : f32
    %14 = vector.broadcast %cst_8 : f32 to vector<4x256xf32>
    %15 = arith.addf %14, %13 : vector<4x256xf32>
    %16 = arith.divf %14, %15 : vector<4x256xf32>
    %17 = vector.shape_cast %16 : vector<4x256xf32> to vector<1x4x256xf32>
    %18 = vector.broadcast %17 : vector<1x4x256xf32> to vector<2x4x256xf32>
    %19 = arith.mulf %0, %18 : vector<2x4x256xf32>
    %c0_9 = arith.constant 0 : index
    %c0_10 = arith.constant 0 : index
    %c0_11 = arith.constant 0 : index
    %20 = vector.load %arg4[%c0_9, %c0_10, %c0_11] : memref<2x4x256xf32, #tpu.memory_space<vmem>>, vector<2x4x256xf32>
    tpu.vector_store %arg4[%c0_9, %c0_10, %c0_11], %19 {strides = array<i32>} : memref<2x4x256xf32, #tpu.memory_space<vmem>>, vector<2x4x256xf32>,
    return
  }
  func.func @transform_0(%arg0: i32) -> i32 {
    %c0_i32 = arith.constant 0 : i32
    %c0_i32_0 = arith.constant 0 : i32
    return %c0_i32 : i32
  }
  func.func @transform_1(%arg0: i32) -> (i32, i32) {
    %c0_i32 = arith.constant 0 : i32
    %c0_i32_0 = arith.constant 0 : i32
    %c0_i32_1 = arith.constant 0 : i32
    return %c0_i32, %c0_i32_0 : i32, i32
  }
  func.func @transform_2(%arg0: i32) -> (i32, i32, i32) {
    %c0_i32 = arith.constant 0 : i32
    %c0_i32_0 = arith.constant 0 : i32
    %c0_i32_1 = arith.constant 0 : i32
    return %c0_i32, %arg0, %c0_i32_0 : i32, i32, i32
  }
  func.func @transform_3(%arg0: i32) -> (i32, i32, i32) {
    %c0_i32 = arith.constant 0 : i32
    %c0_i32_0 = arith.constant 0 : i32
    %c0_i32_1 = arith.constant 0 : i32
    return %c0_i32, %arg0, %c0_i32_0 : i32, i32, i32
  }
}

</mosaic_0001>

<bundles_post_ra>
// kernel: tpu_custom_call.1
= control target key start
LH: loop header
LB: loop body
LE: loop exit
PB: predicated region body
PF: predicated region fallthrough
CT: control target
= control target key end

     0   :  { %9 = vsyncpa [#allocation4], 0  ;;  %s1130_s0 = inlined_call_operand.<no memory space> [shape: f32[1], index: 0, kind: input, shape index: {}]   ;;  %s1131_s1 = inlined_call_operand.hbm [shape: bf16[512,256], index: 1, kind: input, shape index: {}]   ;;  %s1132_s2 = inlined_call_operand.hbm [shape: f32[2,4,256], index: 2, kind: input, shape index: {}]   ;;  %s1133_s3 = inlined_call_operand.hbm [shape: f32[2,4,256], index: 3, kind: output, shape index: {}]  }
   0x1   :  { %10 = vsyncpa [#allocation7], 0 }
   0x2   :  { %11 = vsyncpa [#allocation5], 0  ;;  %s18_s14 = sshll.u32 %s1131_s1, 4  ;;  %s1053_s15 = smov [#allocation3]   ;;  %s19_s14 = int_to_ptr.hbm [resolvable:$true] %s18_s14 }
   0x3   :  { %s20_s16 = sshll.u32 %s1053_s15, 4  ;;  %s31_s19 = sshll.u32 %s1132_s2, 4  ;;  %s21_s16 = int_to_ptr.vmem [resolvable:$true] %s20_s16  ;;  %s32_s19 = int_to_ptr.hbm [resolvable:$true] %s31_s19 }
   0x4   :  { %s1054_s20 = smov 128   ;;  %s1055_s21 = smov 8  }
   0x5   :  { %26 = dma.hbm_to_vmem [thread:$0]  %s19_s14, 8192, %s21_s16, [#allocation4], %s1054_s20, %s1054_s20, %s1055_s21  }
   0x6   :  { %s1056_s22 = smov [#allocation6]  }
   0x7   :  { %s33_s23 = sshll.u32 %s1056_s22, 4  ;;  %s34_s23 = int_to_ptr.vmem [resolvable:$true] %s33_s23 }
   0x8   :  { %39 = dma.hbm_to_vmem [thread:$0]  %s32_s19, 256, %s34_s23, [#allocation7], %s1054_s20, %s1054_s20, %s1055_s21  }
   0x9   :  { %1047 = dma.done.wait [#allocation4], 8192  }
   0xa   :  { %1048 = vsyncadd [#allocation4], 4294959104 }
   0xb   :  { %1049 = dma.done.wait [#allocation7], 256  }
   0xc   :  { %1050 = vsyncadd [#allocation7], 4294967040  ;;  %v698_v0 = vld [vmem:[#allocation3 + $0x70] sm:$0xf]  ;;  %v913_v1 = vld [vmem:[#allocation3 + $0x74] sm:$0xf0] }
   0xd   :  { %v762_v2 = vld [vmem:[#allocation3 + $0xf0] sm:$0xf]  ;;  %v699_v3 = vor.u32 %v913_v1, %v698_v0  ;;  %v929_v4 = vld [vmem:[#allocation3 + $0xf4] sm:$0xf0]  ;;  %v690_v11 = vld [vmem:[#allocation3 + $0x60] sm:$0xf] }
   0xe   :  { %v826_v5 = vld [vmem:[#allocation3 + $0x170] sm:$0xf]  ;;  %v945_v6 = vld [vmem:[#allocation3 + $0x174] sm:$0xf0]  ;;  %v763_v7 = vor.u32 %v929_v4, %v762_v2  ;;  %v911_v13 = vld [vmem:[#allocation3 + $0x64] sm:$0xf0] }
   0xf   :  { %v827_v8 = vor.u32 %v945_v6, %v826_v5  ;;  %v890_v9 = vld [vmem:[#allocation3 + $0x1f0] sm:$0xf]  ;;  %v961_v10 = vld [vmem:[#allocation3 + $0x1f4] sm:$0xf0]  ;;  %469 = vmatpush.bf16.msra.mxu0 %v699_v3  ;;  %v754_v14 = vld [vmem:[#allocation3 + $0xe0] sm:$0xf]  ;;  %v691_v16 = vor.u32 %v911_v13, %v690_v11 }
  0x10   :  { %v891_v12 = vor.u32 %v961_v10, %v890_v9  ;;  %v927_v15 = vld [vmem:[#allocation3 + $0xe4] sm:$0xf0]  ;;  %482 = vmatpush.bf16.msra.mxu1 %v763_v7  ;;  %v818_v18 = vld [vmem:[#allocation3 + $0x160] sm:$0xf]  ;;  %v682_v23 = vld [vmem:[#allocation3 + $0x50] sm:$0xf] }
  0x11   :  { %495 = vmatpush.bf16.msra.mxu2 %v827_v8  ;;  %v755_v17 = vor.u32 %v927_v15, %v754_v14  ;;  %v943_v19 = vld [vmem:[#allocation3 + $0x164] sm:$0xf0]  ;;  %v882_v20 = vld [vmem:[#allocation3 + $0x1e0] sm:$0xf]  ;;  %v909_v24 = vld [vmem:[#allocation3 + $0x54] sm:$0xf0] }
  0x12   :  { %508 = vmatpush.bf16.msra.mxu3 %v891_v12  ;;  %v819_v21 = vor.u32 %v943_v19, %v818_v18  ;;  %v959_v22 = vld [vmem:[#allocation3 + $0x1e4] sm:$0xf0]  ;;  %v746_v26 = vld [vmem:[#allocation3 + $0xd0] sm:$0xf]  ;;  %v925_v27 = vld [vmem:[#allocation3 + $0xd4] sm:$0xf0]  ;;  %v683_v29 = vor.u32 %v909_v24, %v682_v23 }
  0x13   :  { %v883_v25 = vor.u32 %v959_v22, %v882_v20  ;;  %v810_v28 = vld [vmem:[#allocation3 + $0x150] sm:$0xf]  ;;  %470 = vmatpush.bf16.msra.mxu0 %v691_v16  ;;  %v941_v30 = vld [vmem:[#allocation3 + $0x154] sm:$0xf0]  ;;  %v747_v33 = vor.u32 %v925_v27, %v746_v26  ;;  %v674_v35 = vld [vmem:[#allocation3 + $0x40] sm:$0xf] }
  0x14   :  { %v874_v31 = vld [vmem:[#allocation3 + $0x1d0] sm:$0xf]  ;;  %v957_v32 = vld [vmem:[#allocation3 + $0x1d4] sm:$0xf0]  ;;  %483 = vmatpush.bf16.msra.mxu1 %v755_v17  ;;  %v811_v34 = vor.u32 %v941_v30, %v810_v28  ;;  %v907_v36 = vld [vmem:[#allocation3 + $0x44] sm:$0xf0] }
  0x15   :  { %496 = vmatpush.bf16.msra.mxu2 %v819_v21  ;;  %v738_v37 = vld [vmem:[#allocation3 + $0xc0] sm:$0xf]  ;;  %v875_v38 = vor.u32 %v957_v32, %v874_v31  ;;  %v923_v39 = vld [vmem:[#allocation3 + $0xc4] sm:$0xf0]  ;;  %v675_v44 = vor.u32 %v907_v36, %v674_v35  ;;  %v666_v47 = vld [vmem:[#allocation3 + $0x30] sm:$0xf] }
  0x16   :  { %509 = vmatpush.bf16.msra.mxu3 %v883_v25  ;;  %v802_v40 = vld [vmem:[#allocation3 + $0x140] sm:$0xf]  ;;  %v939_v41 = vld [vmem:[#allocation3 + $0x144] sm:$0xf0]  ;;  %v739_v45 = vor.u32 %v923_v39, %v738_v37  ;;  %v905_v48 = vld [vmem:[#allocation3 + $0x34] sm:$0xf0] }
  0x17   :  { %v866_v42 = vld [vmem:[#allocation3 + $0x1c0] sm:$0xf]  ;;  %v955_v43 = vld [vmem:[#allocation3 + $0x1c4] sm:$0xf0]  ;;  %471 = vmatpush.bf16.msra.mxu0 %v683_v29  ;;  %v803_v46 = vor.u32 %v939_v41, %v802_v40  ;;  %v730_v49 = vld [vmem:[#allocation3 + $0xb0] sm:$0xf]  ;;  %v667_v56 = vor.u32 %v905_v48, %v666_v47 }
  0x18   :  { %484 = vmatpush.bf16.msra.mxu1 %v747_v33  ;;  %v867_v50 = vor.u32 %v955_v43, %v866_v42  ;;  %v921_v51 = vld [vmem:[#allocation3 + $0xb4] sm:$0xf0]  ;;  %v794_v52 = vld [vmem:[#allocation3 + $0x130] sm:$0xf]  ;;  %v658_v59 = vld [vmem:[#allocation3 + $0x20] sm:$0xf] }
  0x19   :  { %497 = vmatpush.bf16.msra.mxu2 %v811_v34  ;;  %v937_v53 = vld [vmem:[#allocation3 + $0x134] sm:$0xf0]  ;;  %v858_v54 = vld [vmem:[#allocation3 + $0x1b0] sm:$0xf]  ;;  %v731_v57 = vor.u32 %v921_v51, %v730_v49  ;;  %v903_v60 = vld [vmem:[#allocation3 + $0x24] sm:$0xf0] }
  0x1a   :  { %510 = vmatpush.bf16.msra.mxu3 %v875_v38  ;;  %v953_v55 = vld [vmem:[#allocation3 + $0x1b4] sm:$0xf0]  ;;  %v795_v58 = vor.u32 %v937_v53, %v794_v52  ;;  %v722_v61 = vld [vmem:[#allocation3 + $0xa0] sm:$0xf]  ;;  %v919_v63 = vld [vmem:[#allocation3 + $0xa4] sm:$0xf0]  ;;  %v659_v4 = vor.u32 %v903_v60, %v658_v59 }
  0x1b   :  { %472 = vmatpush.bf16.msra.mxu0 %v675_v44  ;;  %v859_v62 = vor.u32 %v953_v55, %v858_v54  ;;  %v786_v0 = vld [vmem:[#allocation3 + $0x120] sm:$0xf]  ;;  %v935_v1 = vld [vmem:[#allocation3 + $0x124] sm:$0xf0]  ;;  %v650_v5 = vld [vmem:[#allocation3 + $0x10] sm:$0xf]  ;;  %v723_v6 = vor.u32 %v919_v63, %v722_v61 }
  0x1c   :  { %485 = vmatpush.bf16.msra.mxu1 %v739_v45  ;;  %v850_v2 = vld [vmem:[#allocation3 + $0x1a0] sm:$0xf]  ;;  %v951_v3 = vld [vmem:[#allocation3 + $0x1a4] sm:$0xf0]  ;;  %v787_v7 = vor.u32 %v935_v1, %v786_v0  ;;  %v901_v8 = vld [vmem:[#allocation3 + $0x14] sm:$0xf0] }
  0x1d   :  { %498 = vmatpush.bf16.msra.mxu2 %v803_v46  ;;  %v714_v9 = vld [vmem:[#allocation3 + $0x90] sm:$0xf]  ;;  %v917_v10 = vld [vmem:[#allocation3 + $0x94] sm:$0xf0]  ;;  %v851_v11 = vor.u32 %v951_v3, %v850_v2  ;;  %v642_v16 = vld [vmem:[#allocation3] sm:$0xf]  ;;  %v651_v18 = vor.u32 %v901_v8, %v650_v5 }
  0x1e   :  { %511 = vmatpush.bf16.msra.mxu3 %v867_v50  ;;  %v778_v12 = vld [vmem:[#allocation3 + $0x110] sm:$0xf]  ;;  %v933_v13 = vld [vmem:[#allocation3 + $0x114] sm:$0xf0]  ;;  %v899_v17 = vld [vmem:[#allocation3 + $0x4] sm:$0xf0]  ;;  %v715_v23 = vor.u32 %v917_v10, %v714_v9 }
  0x1f   :  { %473 = vmatpush.bf16.msra.mxu0 %v667_v56  ;;  %v842_v14 = vld [vmem:[#allocation3 + $0x190] sm:$0xf]  ;;  %v949_v15 = vld [vmem:[#allocation3 + $0x194] sm:$0xf0]  ;;  %v706_v19 = vld [vmem:[#allocation3 + $0x80] sm:$0xf]  ;;  %v779_v24 = vor.u32 %v933_v13, %v778_v12  ;;  %v643_v33 = vor.u32 %v899_v17, %v642_v16 }
  0x20   :  { %486 = vmatpush.bf16.msra.mxu1 %v731_v57  ;;  %v915_v20 = vld [vmem:[#allocation3 + $0x84] sm:$0xf0]  ;;  %v770_v21 = vld [vmem:[#allocation3 + $0x100] sm:$0xf]  ;;  %v843_v28 = vor.u32 %v949_v15, %v842_v14  ;;  %v912_v30 = vld [vmem:[#allocation3 + $0x74] sm:$0xf] }
  0x21   :  { %499 = vmatpush.bf16.msra.mxu2 %v795_v58  ;;  %v931_v22 = vld [vmem:[#allocation3 + $0x104] sm:$0xf0]  ;;  %v834_v25 = vld [vmem:[#allocation3 + $0x180] sm:$0xf]  ;;  %v700_v31 = vld [vmem:[#allocation3 + $0x78] sm:$0xf0]  ;;  %v707_v37 = vor.u32 %v915_v20, %v706_v19 }
  0x22   :  { %512 = vmatpush.bf16.msra.mxu3 %v859_v62  ;;  %v1090_v26 = vld [vmem:[#allocation6] sm:$0xff]  ;;  %v1092_v27 = vld [vmem:[#allocation6 + $0x8] sm:$0xff]  ;;  %v928_v32 = vld [vmem:[#allocation3 + $0xf4] sm:$0xf]  ;;  %v771_v38 = vor.u32 %v931_v22, %v770_v21  ;;  %v703_v42 = vor.u32 %v912_v30, %v700_v31  ;;  %vm64_vm0 = vcmask 1043456   ;;  %s626_s27 = sshll.u32 %s1133_s3, 4  ;;  %s627_s27 = int_to_ptr.hbm [resolvable:$true] %s626_s27 }
  0x23   :  { %474 = vmatpush.bf16.msra.mxu0 %v659_v4  ;;  %v947_v29 = vld [vmem:[#allocation3 + $0x184] sm:$0xf0]  ;;  %53 = vst [vmem:[#allocation1] ss:$2 sm:$0xff] %v1090_v26  ;;  %v764_v34 = vld [vmem:[#allocation3 + $0xf8] sm:$0xf0]  ;;  %v50_v43 = vmax.f32 %v1090_v26, %v1092_v27 }
  0x24   :  { %487 = vmatpush.bf16.msra.mxu1 %v723_v6  ;;  %57 = vst [vmem:[#allocation1 + $0x10] ss:$2 sm:$0xff] %v1092_v27  ;;  %v944_v35 = vld [vmem:[#allocation3 + $0x174] sm:$0xf]  ;;  %v828_v36 = vld [vmem:[#allocation3 + $0x178] sm:$0xf0]  ;;  %v835_v41 = vor.u32 %v947_v29, %v834_v25  ;;  %v767_v46 = vor.u32 %v928_v32, %v764_v34 }
  0x25   :  { %500 = vmatpush.bf16.msra.mxu2 %v787_v7  ;;  %v960_v39 = vld [vmem:[#allocation3 + $0x1f4] sm:$0xf]  ;;  %v892_v40 = vld [vmem:[#allocation3 + $0x1f8] sm:$0xf0]  ;;  %v910_v44 = vld [vmem:[#allocation3 + $0x64] sm:$0xf]  ;;  %v831_v47 = vor.u32 %v944_v35, %v828_v36 }
  0x26   :  { %513 = vmatpush.bf16.msra.mxu3 %v851_v11  ;;  %v692_v45 = vld [vmem:[#allocation3 + $0x68] sm:$0xf0]  ;;  %v926_v48 = vld [vmem:[#allocation3 + $0xe4] sm:$0xf]  ;;  %v895_v51 = vor.u32 %v960_v39, %v892_v40  ;;  %v908_v57 = vld [vmem:[#allocation3 + $0x54] sm:$0xf] }
  0x27   :  { %475 = vmatpush.bf16.msra.mxu0 %v651_v18  ;;  %v756_v49 = vld [vmem:[#allocation3 + $0xe8] sm:$0xf0]  ;;  %v942_v50 = vld [vmem:[#allocation3 + $0x164] sm:$0xf]  ;;  %v684_v58 = vld [vmem:[#allocation3 + $0x58] sm:$0xf0]  ;;  %v695_v61 = vor.u32 %v910_v44, %v692_v45 }
  0x28   :  { %488 = vmatpush.bf16.msra.mxu1 %v715_v23  ;;  %v820_v52 = vld [vmem:[#allocation3 + $0x168] sm:$0xf0]  ;;  %v958_v53 = vld [vmem:[#allocation3 + $0x1e4] sm:$0xf]  ;;  %v759_v1 = vor.u32 %v926_v48, %v756_v49  ;;  %v924_v6 = vld [vmem:[#allocation3 + $0xd4] sm:$0xf]  ;;  %v687_v12 = vor.u32 %v908_v57, %v684_v58 }
  0x29   :  { %501 = vmatpush.bf16.msra.mxu2 %v779_v24  ;;  %v884_v54 = vld [vmem:[#allocation3 + $0x1e8] sm:$0xf0]  ;;  %v823_v2 = vor.u32 %v942_v50, %v820_v52  ;;  %v748_v7 = vld [vmem:[#allocation3 + $0xd8] sm:$0xf0]  ;;  %v940_v9 = vld [vmem:[#allocation3 + $0x154] sm:$0xf] }
  0x2a   :  { %514 = vmatpush.bf16.msra.mxu3 %v843_v28  ;;  %v54_v55 = vld.sshfl [vmem:[#allocation1] sm:$0xff pattern:$0x75316420]  ;;  %v55_v56 = vld.sshfl [vmem:[#allocation1 + $0x8] sm:$0xff pattern:$0x75316420]  ;;  %v887_v5 = vor.u32 %v958_v53, %v884_v54  ;;  %v751_v16 = vor.u32 %v924_v6, %v748_v7 }
  0x2b   :  { %476 = vmatpush.bf16.msra.mxu0 %v643_v33  ;;  %v58_v59 = vld.sshfl [vmem:[#allocation1 + $0x10] sm:$0xff pattern:$0x75316420]  ;;  %v65_v60 = vsel %vm64_vm0, %v54_v55, 0.0  ;;  %74 = vst [vmem:[#allocation1] ss:$2 sm:$0xff] %v50_v43 }
  0x2c   :  { %489 = vmatpush.bf16.msra.mxu1 %v707_v37  ;;  %v66_v62 = vsel %vm64_vm0, %v58_v59, 0.0  ;;  %v59_v63 = vld.sshfl [vmem:[#allocation1 + $0x18] sm:$0xff pattern:$0x75316420]  ;;  %v68_v0 = vsel %vm64_vm0, %v55_v56, 0.0 }
  0x2d   :  { %502 = vmatpush.bf16.msra.mxu2 %v771_v38  ;;  %v67_v3 = vadd.f32 %v66_v62, %v65_v60  ;;  %v69_v4 = vsel %vm64_vm0, %v59_v63, 0.0  ;;  %v812_v10 = vld [vmem:[#allocation3 + $0x158] sm:$0xf0]  ;;  %v956_v13 = vld [vmem:[#allocation3 + $0x1d4] sm:$0xf] }
  0x2e   :  { %515 = vmatpush.bf16.msra.mxu3 %v835_v41  ;;  %v70_v8 = vadd.f32 %v69_v4, %v68_v0  ;;  %v876_v14 = vld [vmem:[#allocation3 + $0x1d8] sm:$0xf0]  ;;  %v906_v17 = vld [vmem:[#allocation3 + $0x44] sm:$0xf]  ;;  %v676_v18 = vld [vmem:[#allocation3 + $0x48] sm:$0xf0]  ;;  %v815_v28 = vor.u32 %v940_v9, %v812_v10 }
  0x2f   :  { %521 = vmatpush.bf16.msrb.mxu0 %v703_v42  ;;  %v71_v11 = vmul.f32 0.5, %v67_v3  ;;  %v922_v20 = vld [vmem:[#allocation3 + $0xc4] sm:$0xf]  ;;  %v740_v21 = vld [vmem:[#allocation3 + $0xc8] sm:$0xf0]  ;;  %v879_v29 = vor.u32 %v956_v13, %v876_v14  ;;  %v679_v32 = vor.u32 %v906_v17, %v676_v18 }
  0x30   :  { %534 = vmatpush.bf16.msrb.mxu1 %v767_v46  ;;  %v72_v15 = vmul.f32 0.5, %v70_v8  ;;  %v938_v22 = vld [vmem:[#allocation3 + $0x144] sm:$0xf]  ;;  %v804_v33 = vld [vmem:[#allocation3 + $0x148] sm:$0xf0]  ;;  %v743_v36 = vor.u32 %v922_v20, %v740_v21 }
  0x31   :  { %547 = vmatpush.bf16.msrb.mxu2 %v831_v47  ;;  %v1102_v19 = vpack.c.bf16 %v71_v11, %v71_v11  ;;  %v954_v34 = vld [vmem:[#allocation3 + $0x1c4] sm:$0xf]  ;;  %v868_v35 = vld [vmem:[#allocation3 + $0x1c8] sm:$0xf0]  ;;  %v904_v37 = vld [vmem:[#allocation3 + $0x34] sm:$0xf]  ;;  %v807_v41 = vor.u32 %v938_v22, %v804_v33 }
  0x32   :  { %560 = vmatpush.bf16.msrb.mxu3 %v895_v51  ;;  %v75_v23 = vld.sshfl [vmem:[#allocation1] sm:$0xff pattern:$0x75316420]  ;;  %v1104_v24 = vpack.c.bf16 %v72_v15, %v72_v15  ;;  %v76_v25 = vld.sshfl [vmem:[#allocation1 + $0x8] sm:$0xff pattern:$0x75316420]  ;;  %v871_v42 = vor.u32 %v954_v34, %v868_v35 }
  0x33   :  { %522 = vmatpush.bf16.msrb.mxu0 %v695_v61  ;;  %503 = vmatmul.bf16.vlgmr.msra.gmra.mxu2 %v1102_v19  ;;  %v1107_v30 = vpack.c.bf16 %v75_v23, %v75_v23  ;;  %v1109_v31 = vpack.c.bf16 %v76_v25, %v76_v25  ;;  %v668_v38 = vld [vmem:[#allocation3 + $0x38] sm:$0xf0]  ;;  %v920_v39 = vld [vmem:[#allocation3 + $0xb4] sm:$0xf]  ;;  %v902_v49 = vld [vmem:[#allocation3 + $0x24] sm:$0xf]  ;;  %v148_v25 = vstv %s1130_s0 }
  0x34   :  { %535 = vmatpush.bf16.msrb.mxu1 %v759_v1  ;;  %516 = vmatmul.bf16.vlgmr.msra.gmra.mxu3 %v1104_v24  ;;  %v732_v40 = vld [vmem:[#allocation3 + $0xb8] sm:$0xf0]  ;;  %v936_v43 = vld [vmem:[#allocation3 + $0x134] sm:$0xf]  ;;  %v671_v44 = vor.u32 %v904_v37, %v668_v38  ;;  %v660_v50 = vld [vmem:[#allocation3 + $0x28] sm:$0xf0] }
  0x35   :  { %548 = vmatpush.bf16.msrb.mxu2 %v823_v2  ;;  %477 = vmatmul.bf16.vlgmr.msra.gmra.mxu0 %v1107_v30  ;;  %v796_v45 = vld [vmem:[#allocation3 + $0x138] sm:$0xf0]  ;;  %v952_v46 = vld [vmem:[#allocation3 + $0x1b4] sm:$0xf]  ;;  %v735_v48 = vor.u32 %v920_v39, %v732_v40  ;;  %v918_v51 = vld [vmem:[#allocation3 + $0xa4] sm:$0xf]  ;;  %v663_v56 = vor.u32 %v902_v49, %v660_v50 }
  0x36   :  { %561 = vmatpush.bf16.msrb.mxu3 %v887_v5  ;;  %490 = vmatmul.bf16.vlgmr.msra.gmra.mxu1 %v1109_v31  ;;  %v860_v47 = vld [vmem:[#allocation3 + $0x1b8] sm:$0xf0]  ;;  %v724_v52 = vld [vmem:[#allocation3 + $0xa8] sm:$0xf0]  ;;  %v799_v53 = vor.u32 %v936_v43, %v796_v45  ;;  %v934_v55 = vld [vmem:[#allocation3 + $0x124] sm:$0xf] }
  0x37   :  { %523 = vmatpush.bf16.msrb.mxu0 %v687_v12  ;;  %v863_v54 = vor.u32 %v952_v46, %v860_v47  ;;  %v788_v57 = vld [vmem:[#allocation3 + $0x128] sm:$0xf0]  ;;  %v950_v58 = vld [vmem:[#allocation3 + $0x1a4] sm:$0xf]  ;;  %v727_v60 = vor.u32 %v918_v51, %v724_v52  ;;  %v900_v61 = vld [vmem:[#allocation3 + $0x14] sm:$0xf] }
  0x38   :  { %536 = vmatpush.bf16.msrb.mxu1 %v751_v16  ;;  %v852_v59 = vld [vmem:[#allocation3 + $0x1a8] sm:$0xf0]  ;;  %v652_v62 = vld [vmem:[#allocation3 + $0x18] sm:$0xf0]  ;;  %v916_v63 = vld [vmem:[#allocation3 + $0x94] sm:$0xf]  ;;  %v791_v1 = vor.u32 %v934_v55, %v788_v57 }
  0x39   :  { %549 = vmatpush.bf16.msrb.mxu2 %v815_v28  ;;  %v716_v0 = vld [vmem:[#allocation3 + $0x98] sm:$0xf0]  ;;  %v855_v2 = vor.u32 %v950_v58, %v852_v59  ;;  %v932_v3 = vld [vmem:[#allocation3 + $0x114] sm:$0xf]  ;;  %v655_v4 = vor.u32 %v900_v61, %v652_v62  ;;  %v898_v9 = vld [vmem:[#allocation3 + $0x4] sm:$0xf] }
  0x3a   :  { %562 = vmatpush.bf16.msrb.mxu3 %v879_v29  ;;  %v780_v5 = vld [vmem:[#allocation3 + $0x118] sm:$0xf0]  ;;  %v948_v6 = vld [vmem:[#allocation3 + $0x194] sm:$0xf]  ;;  %v719_v8 = vor.u32 %v916_v63, %v716_v0  ;;  %v644_v10 = vld [vmem:[#allocation3 + $0x8] sm:$0xf0] }
  0x3b   :  { %524 = vmatpush.bf16.msrb.mxu0 %v679_v32  ;;  %v844_v7 = vld [vmem:[#allocation3 + $0x198] sm:$0xf0]  ;;  %v914_v11 = vld [vmem:[#allocation3 + $0x84] sm:$0xf]  ;;  %v708_v12 = vld [vmem:[#allocation3 + $0x88] sm:$0xf0]  ;;  %v783_v13 = vor.u32 %v932_v3, %v780_v5  ;;  %v647_v16 = vor.u32 %v898_v9, %v644_v10 }
  0x3c   :  { %537 = vmatpush.bf16.msrb.mxu1 %v743_v36  ;;  %v847_v14 = vor.u32 %v948_v6, %v844_v7  ;;  %v930_v15 = vld [vmem:[#allocation3 + $0x104] sm:$0xf]  ;;  %v772_v17 = vld [vmem:[#allocation3 + $0x108] sm:$0xf0]  ;;  %v711_v21 = vor.u32 %v914_v11, %v708_v12  ;;  %s1057_s0 = smov [#allocation8]  }
  0x3d   :  { %550 = vmatpush.bf16.msrb.mxu2 %v807_v41  ;;  %v946_v18 = vld [vmem:[#allocation3 + $0x184] sm:$0xf]  ;;  %v836_v20 = vld [vmem:[#allocation3 + $0x188] sm:$0xf0]  ;;  %v775_v22 = vor.u32 %v930_v15, %v772_v17  ;;  %s624_s24 = sshll.u32 %s1057_s0, 4  ;;  %s625_s24 = int_to_ptr.vmem [resolvable:$true] %s624_s24 }
  0x3e   :  { %563 = vmatpush.bf16.msrb.mxu3 %v871_v42  ;;  %v839_v23 = vor.u32 %v946_v18, %v836_v20 }
  0x3f   :  { %525 = vmatpush.bf16.msrb.mxu0 %v671_v44 }
  0x40   :  { %538 = vmatpush.bf16.msrb.mxu1 %v735_v48 }
  0x41   :  { %551 = vmatpush.bf16.msrb.mxu2 %v799_v53 }
  0x42   :  { %564 = vmatpush.bf16.msrb.mxu3 %v863_v54 }
  0x43   :  { %526 = vmatpush.bf16.msrb.mxu0 %v663_v56 }
  0x44   :  { %539 = vmatpush.bf16.msrb.mxu1 %v727_v60 }
  0x45   :  { %552 = vmatpush.bf16.msrb.mxu2 %v791_v1 }
  0x46   :  { %565 = vmatpush.bf16.msrb.mxu3 %v855_v2 }
  0x47   :  { %527 = vmatpush.bf16.msrb.mxu0 %v655_v4 }
  0x48   :  { %540 = vmatpush.bf16.msrb.mxu1 %v719_v8 }
  0x49   :  { %553 = vmatpush.bf16.msrb.mxu2 %v783_v13 }
  0x4a   :  { %566 = vmatpush.bf16.msrb.mxu3 %v847_v14 }
  0x4b   :  { %528 = vmatpush.bf16.msrb.mxu0 %v647_v16 }
  0x4c   :  { %541 = vmatpush.bf16.msrb.mxu1 %v711_v21 }
  0x4d   :  { %554 = vmatpush.bf16.msrb.mxu2 %v775_v22 }
  0x4e   :  { %567 = vmatpush.bf16.msrb.mxu3 %v839_v23  ;;  %529 = vmatmul.bf16.vlgmr.msrb.gmra.mxu0 %v1107_v30 }
  0x4f   :  { %542 = vmatmul.bf16.vlgmr.msrb.gmra.mxu1 %v1109_v31 }
  0x50   :  { %555 = vmatmul.bf16.vlgmr.msrb.gmra.mxu2 %v1102_v19 }
  0x51   :  { %568 = vmatmul.bf16.vlgmr.msrb.gmra.mxu3 %v1104_v24 }
  0xb2   :  { %v478_v28 = vpop.f32.mrf.mxu0 }
  0xb3   :  { %v491_v29 = vpop.f32.mrf.mxu1  ;;  %v479_v32 = vadd.f32 %v478_v28, %v148_v25 }
  0xb5   :  { %v492_v35 = vadd.f32 %v491_v29, %v479_v32 }
  0xb6   :  { %v504_v33 = vpop.f32.mrf.mxu2 }
  0xb7   :  { %v517_v34 = vpop.f32.mrf.mxu3  ;;  %v505_v38 = vadd.f32 %v504_v33, %v492_v35 }
  0xb9   :  { %v518_v31 = vadd.f32 %v517_v34, %v505_v38 }
  0xba   :  { %v480_v36 = vpop.f32.mrf.mxu0 }
  0xbb   :  { %v493_v37 = vpop.f32.mrf.mxu1  ;;  %v896_v40 = vmul.f32 -1.442695, %v518_v31 }
  0xbd   :  { %967 = vpow2.f32 %v896_v40 }
  0xbe   :  { %v506_v30 = vpop.f32.mrf.mxu2 }
  0xbf   :  { %v519_v39 = vpop.f32.mrf.mxu3 }
  0xc3   :  { %v968_v43 = vpop.eup %967 }
  0xc4   :  { %v579_v49 = vadd.f32 1.0, %v968_v43 }
  0xc6   :  { %969 = vrcp.f32 %v579_v49  ;;  %vm586_vm1 = vweird.f32 %v579_v49  ;;  %v592_v63 = vand.u32 2147483648, %v579_v49  ;;  %v590_v1 = vand.u32 2147483647, %v579_v49 }
  0xc8   :  { %v593_v7 = vor.u32 1.1754944e-38, %v592_v63  ;;  %vm591_vm7 = vcmp.eq.f32.partialorder %v590_v1, 8.507059e+37 }
  0xcb   :  { %v530_v19 = vpop.f32.mrf.mxu0 }
  0xcc   :  { %v543_v41 = vpop.f32.mrf.mxu1  ;;  %v531_v24 = vadd.f32 %v530_v19, %v148_v25  ;;  %v970_v54 = vpop.eup %969 }
  0xcd   :  { %v582_v57 = vmul.f32 %v970_v54, %v579_v49  ;;  %vm587_vm2 = vweird.f32 %v970_v54 }
  0xce   :  { %v544_v42 = vadd.f32 %v543_v41, %v531_v24  ;;  %vm588_vm4 = vmor %vm586_vm1, %vm587_vm2 }
  0xcf   :  { %v583_v58 = vsub.f32 1.0, %v582_v57 }
  0xd1   :  { %v584_v60 = vmul.f32 %v970_v54, %v583_v58 }
  0xd3   :  { %v556_v44 = vpop.f32.mrf.mxu2  ;;  %v532_v47 = vpop.f32.mrf.mxu0  ;;  %v585_v4 = vadd.f32 %v970_v54, %v584_v60 }
  0xd4   :  { %v569_v45 = vpop.f32.mrf.mxu3  ;;  %v557_v46 = vadd.f32 %v556_v44, %v544_v42  ;;  %v545_v48 = vpop.f32.mrf.mxu1 }
  0xd5   :  { %v589_v8 = vsel %vm588_vm4, %v970_v54, %v585_v4 }
  0xd6   :  { %v570_v50 = vadd.f32 %v569_v45, %v557_v46  ;;  %v594_v12 = vsel %vm591_vm7, %v593_v7, %v589_v8 }
  0xd8   :  { %v897_v51 = vmul.f32 -1.442695, %v570_v50 }
  0xda   :  { %971 = vpow2.f32 %v897_v51 }
  0xdb   :  { %v558_v52 = vpop.f32.mrf.mxu2 }
  0xdc   :  { %v571_v53 = vpop.f32.mrf.mxu3 }
  0xe0   :  { %v972_v55 = vpop.eup %971 }
  0xe1   :  { %v580_v56 = vadd.f32 1.0, %v972_v55 }
  0xe3   :  { %973 = vrcp.f32 %v580_v56  ;;  %v607_v0 = vand.u32 2147483648, %v580_v56  ;;  %v605_v3 = vand.u32 2147483647, %v580_v56  ;;  %vm601_vm5 = vweird.f32 %v580_v56 }
  0xe5   :  { %v608_v6 = vor.u32 1.1754944e-38, %v607_v0  ;;  %vm606_vm8 = vcmp.eq.f32.partialorder %v605_v3, 8.507059e+37 }
  0xe9   :  { %v974_v59 = vpop.eup %973 }
  0xea   :  { %v597_v61 = vmul.f32 %v974_v59, %v580_v56  ;;  %vm602_vm3 = vweird.f32 %v974_v59 }
  0xeb   :  { %vm603_vm6 = vmor %vm601_vm5, %vm602_vm3 }
  0xec   :  { %v598_v62 = vsub.f32 1.0, %v597_v61 }
  0xee   :  { %v599_v2 = vmul.f32 %v974_v59, %v598_v62 }
  0xf0   :  { %v600_v5 = vadd.f32 %v974_v59, %v599_v2 }
  0xf2   :  { %v604_v9 = vsel %vm603_vm6, %v974_v59, %v600_v5 }
  0xf3   :  { %v609_v10 = vsel %vm606_vm8, %v608_v6, %v604_v9 }
  0xf4   :  { %v613_v11 = vrot.slane %v609_v10, 4 }
  0xf6   :  { %v614_v13 = vsel %vm64_vm0, %v594_v12, %v613_v11 }
  0xf7   :  { %v616_v14 = vmul.f32 %v614_v13, %v1090_v26  ;;  %v617_v15 = vmul.f32 %v614_v13, %v1092_v27 }
  0xf9   :  { %618 = vst [vmem:[#allocation8] sm:$0xff] %v616_v14 }
  0xfa   :  { %619 = vst [vmem:[#allocation8 + $0x8] sm:$0xff] %v617_v15 }
  0xfb   :  { %632 = dma.vmem_to_hbm [thread:$0]  %s625_s24, 256, %s627_s27, [#allocation5], %s1054_s20, %s1054_s20, %s1055_s21  }
  0xfc   :  { %1051 = dma.done.wait [#allocation5], 256  }
  0xfd   :  { %1052 = vsyncadd [#allocation5], 4294967040 }
  0xfe   :  { %637 = vsyncpa [#allocation4], 1 }
  0xff   :  { %638 = vsyncpa [#allocation7], 1 }
 0x100   :  { %639 = vsyncpa [#allocation5], 1 }

// kernel: tpu_custom_call.1
= control target key start
LH: loop header
LB: loop body
LE: loop exit
PB: predicated region body
PF: predicated region fallthrough
CT: control target
= control target key end

     0   :  { %9 = vsyncpa [#allocation4], 0  ;;  %s1130_s0 = inlined_call_operand.<no memory space> [shape: f32[1], index: 0, kind: input, shape index: {}]   ;;  %s1131_s1 = inlined_call_operand.hbm [shape: bf16[512,256], index: 1, kind: input, shape index: {}]   ;;  %s1132_s2 = inlined_call_operand.hbm [shape: f32[2,4,256], index: 2, kind: input, shape index: {}]   ;;  %s1133_s3 = inlined_call_operand.hbm [shape: f32[2,4,256], index: 3, kind: output, shape index: {}]  }
   0x1   :  { %10 = vsyncpa [#allocation7], 0 }
   0x2   :  { %11 = vsyncpa [#allocation5], 0  ;;  %s18_s14 = sshll.u32 %s1131_s1, 4  ;;  %s1053_s15 = smov [#allocation3]   ;;  %s19_s14 = int_to_ptr.hbm [resolvable:$true] %s18_s14 }
   0x3   :  { %s20_s16 = sshll.u32 %s1053_s15, 4  ;;  %s31_s19 = sshll.u32 %s1132_s2, 4  ;;  %s21_s16 = int_to_ptr.vmem [resolvable:$true] %s20_s16  ;;  %s32_s19 = int_to_ptr.hbm [resolvable:$true] %s31_s19 }
   0x4   :  { %s1054_s20 = smov 128   ;;  %s1055_s21 = smov 8  }
   0x5   :  { %26 = dma.hbm_to_vmem [thread:$0]  %s19_s14, 8192, %s21_s16, [#allocation4], %s1054_s20, %s1054_s20, %s1055_s21  }
   0x6   :  { %s1056_s22 = smov [#allocation6]  }
   0x7   :  { %s33_s23 = sshll.u32 %s1056_s22, 4  ;;  %s34_s23 = int_to_ptr.vmem [resolvable:$true] %s33_s23 }
   0x8   :  { %39 = dma.hbm_to_vmem [thread:$0]  %s32_s19, 256, %s34_s23, [#allocation7], %s1054_s20, %s1054_s20, %s1055_s21  }
   0x9   :  { %1047 = dma.done.wait [#allocation4], 8192  }
   0xa   :  { %1048 = vsyncadd [#allocation4], 4294959104 }
   0xb   :  { %1049 = dma.done.wait [#allocation7], 256  }
   0xc   :  { %1050 = vsyncadd [#allocation7], 4294967040  ;;  %v698_v0 = vld [vmem:[#allocation3 + $0x70] sm:$0xf]  ;;  %v913_v1 = vld [vmem:[#allocation3 + $0x74] sm:$0xf0] }
   0xd   :  { %v762_v2 = vld [vmem:[#allocation3 + $0xf0] sm:$0xf]  ;;  %v699_v3 = vor.u32 %v913_v1, %v698_v0  ;;  %v929_v4 = vld [vmem:[#allocation3 + $0xf4] sm:$0xf0]  ;;  %v690_v11 = vld [vmem:[#allocation3 + $0x60] sm:$0xf] }
   0xe   :  { %v826_v5 = vld [vmem:[#allocation3 + $0x170] sm:$0xf]  ;;  %v945_v6 = vld [vmem:[#allocation3 + $0x174] sm:$0xf0]  ;;  %v763_v7 = vor.u32 %v929_v4, %v762_v2  ;;  %v911_v13 = vld [vmem:[#allocation3 + $0x64] sm:$0xf0] }
   0xf   :  { %v827_v8 = vor.u32 %v945_v6, %v826_v5  ;;  %v890_v9 = vld [vmem:[#allocation3 + $0x1f0] sm:$0xf]  ;;  %v961_v10 = vld [vmem:[#allocation3 + $0x1f4] sm:$0xf0]  ;;  %469 = vmatpush.bf16.msra.mxu0 %v699_v3  ;;  %v754_v14 = vld [vmem:[#allocation3 + $0xe0] sm:$0xf]  ;;  %v691_v16 = vor.u32 %v911_v13, %v690_v11 }
  0x10   :  { %v891_v12 = vor.u32 %v961_v10, %v890_v9  ;;  %v927_v15 = vld [vmem:[#allocation3 + $0xe4] sm:$0xf0]  ;;  %482 = vmatpush.bf16.msra.mxu1 %v763_v7  ;;  %v818_v18 = vld [vmem:[#allocation3 + $0x160] sm:$0xf]  ;;  %v682_v23 = vld [vmem:[#allocation3 + $0x50] sm:$0xf] }
  0x11   :  { %495 = vmatpush.bf16.msra.mxu2 %v827_v8  ;;  %v755_v17 = vor.u32 %v927_v15, %v754_v14  ;;  %v943_v19 = vld [vmem:[#allocation3 + $0x164] sm:$0xf0]  ;;  %v882_v20 = vld [vmem:[#allocation3 + $0x1e0] sm:$0xf]  ;;  %v909_v24 = vld [vmem:[#allocation3 + $0x54] sm:$0xf0] }
  0x12   :  { %508 = vmatpush.bf16.msra.mxu3 %v891_v12  ;;  %v819_v21 = vor.u32 %v943_v19, %v818_v18  ;;  %v959_v22 = vld [vmem:[#allocation3 + $0x1e4] sm:$0xf0]  ;;  %v746_v26 = vld [vmem:[#allocation3 + $0xd0] sm:$0xf]  ;;  %v925_v27 = vld [vmem:[#allocation3 + $0xd4] sm:$0xf0]  ;;  %v683_v29 = vor.u32 %v909_v24, %v682_v23 }
  0x13   :  { %v883_v25 = vor.u32 %v959_v22, %v882_v20  ;;  %v810_v28 = vld [vmem:[#allocation3 + $0x150] sm:$0xf]  ;;  %470 = vmatpush.bf16.msra.mxu0 %v691_v16  ;;  %v941_v30 = vld [vmem:[#allocation3 + $0x154] sm:$0xf0]  ;;  %v747_v33 = vor.u32 %v925_v27, %v746_v26  ;;  %v674_v35 = vld [vmem:[#allocation3 + $0x40] sm:$0xf] }
  0x14   :  { %v874_v31 = vld [vmem:[#allocation3 + $0x1d0] sm:$0xf]  ;;  %v957_v32 = vld [vmem:[#allocation3 + $0x1d4] sm:$0xf0]  ;;  %483 = vmatpush.bf16.msra.mxu1 %v755_v17  ;;  %v811_v34 = vor.u32 %v941_v30, %v810_v28  ;;  %v907_v36 = vld [vmem:[#allocation3 + $0x44] sm:$0xf0] }
  0x15   :  { %496 = vmatpush.bf16.msra.mxu2 %v819_v21  ;;  %v738_v37 = vld [vmem:[#allocation3 + $0xc0] sm:$0xf]  ;;  %v875_v38 = vor.u32 %v957_v32, %v874_v31  ;;  %v923_v39 = vld [vmem:[#allocation3 + $0xc4] sm:$0xf0]  ;;  %v675_v44 = vor.u32 %v907_v36, %v674_v35  ;;  %v666_v47 = vld [vmem:[#allocation3 + $0x30] sm:$0xf] }
  0x16   :  { %509 = vmatpush.bf16.msra.mxu3 %v883_v25  ;;  %v802_v40 = vld [vmem:[#allocation3 + $0x140] sm:$0xf]  ;;  %v939_v41 = vld [vmem:[#allocation3 + $0x144] sm:$0xf0]  ;;  %v739_v45 = vor.u32 %v923_v39, %v738_v37  ;;  %v905_v48 = vld [vmem:[#allocation3 + $0x34] sm:$0xf0] }
  0x17   :  { %v866_v42 = vld [vmem:[#allocation3 + $0x1c0] sm:$0xf]  ;;  %v955_v43 = vld [vmem:[#allocation3 + $0x1c4] sm:$0xf0]  ;;  %471 = vmatpush.bf16.msra.mxu0 %v683_v29  ;;  %v803_v46 = vor.u32 %v939_v41, %v802_v40  ;;  %v730_v49 = vld [vmem:[#allocation3 + $0xb0] sm:$0xf]  ;;  %v667_v56 = vor.u32 %v905_v48, %v666_v47 }
  0x18   :  { %484 = vmatpush.bf16.msra.mxu1 %v747_v33  ;;  %v867_v50 = vor.u32 %v955_v43, %v866_v42  ;;  %v921_v51 = vld [vmem:[#allocation3 + $0xb4] sm:$0xf0]  ;;  %v794_v52 = vld [vmem:[#allocation3 + $0x130] sm:$0xf]  ;;  %v658_v59 = vld [vmem:[#allocation3 + $0x20] sm:$0xf] }
  0x19   :  { %497 = vmatpush.bf16.msra.mxu2 %v811_v34  ;;  %v937_v53 = vld [vmem:[#allocation3 + $0x134] sm:$0xf0]  ;;  %v858_v54 = vld [vmem:[#allocation3 + $0x1b0] sm:$0xf]  ;;  %v731_v57 = vor.u32 %v921_v51, %v730_v49  ;;  %v903_v60 = vld [vmem:[#allocation3 + $0x24] sm:$0xf0] }
  0x1a   :  { %510 = vmatpush.bf16.msra.mxu3 %v875_v38  ;;  %v953_v55 = vld [vmem:[#allocation3 + $0x1b4] sm:$0xf0]  ;;  %v795_v58 = vor.u32 %v937_v53, %v794_v52  ;;  %v722_v61 = vld [vmem:[#allocation3 + $0xa0] sm:$0xf]  ;;  %v919_v63 = vld [vmem:[#allocation3 + $0xa4] sm:$0xf0]  ;;  %v659_v4 = vor.u32 %v903_v60, %v658_v59 }
  0x1b   :  { %472 = vmatpush.bf16.msra.mxu0 %v675_v44  ;;  %v859_v62 = vor.u32 %v953_v55, %v858_v54  ;;  %v786_v0 = vld [vmem:[#allocation3 + $0x120] sm:$0xf]  ;;  %v935_v1 = vld [vmem:[#allocation3 + $0x124] sm:$0xf0]  ;;  %v650_v5 = vld [vmem:[#allocation3 + $0x10] sm:$0xf]  ;;  %v723_v6 = vor.u32 %v919_v63, %v722_v61 }
  0x1c   :  { %485 = vmatpush.bf16.msra.mxu1 %v739_v45  ;;  %v850_v2 = vld [vmem:[#allocation3 + $0x1a0] sm:$0xf]  ;;  %v951_v3 = vld [vmem:[#allocation3 + $0x1a4] sm:$0xf0]  ;;  %v787_v7 = vor.u32 %v935_v1, %v786_v0  ;;  %v901_v8 = vld [vmem:[#allocation3 + $0x14] sm:$0xf0] }
  0x1d   :  { %498 = vmatpush.bf16.msra.mxu2 %v803_v46  ;;  %v714_v9 = vld [vmem:[#allocation3 + $0x90] sm:$0xf]  ;;  %v917_v10 = vld [vmem:[#allocation3 + $0x94] sm:$0xf0]  ;;  %v851_v11 = vor.u32 %v951_v3, %v850_v2  ;;  %v642_v16 = vld [vmem:[#allocation3] sm:$0xf]  ;;  %v651_v18 = vor.u32 %v901_v8, %v650_v5 }
  0x1e   :  { %511 = vmatpush.bf16.msra.mxu3 %v867_v50  ;;  %v778_v12 = vld [vmem:[#allocation3 + $0x110] sm:$0xf]  ;;  %v933_v13 = vld [vmem:[#allocation3 + $0x114] sm:$0xf0]  ;;  %v899_v17 = vld [vmem:[#allocation3 + $0x4] sm:$0xf0]  ;;  %v715_v23 = vor.u32 %v917_v10, %v714_v9 }
  0x1f   :  { %473 = vmatpush.bf16.msra.mxu0 %v667_v56  ;;  %v842_v14 = vld [vmem:[#allocation3 + $0x190] sm:$0xf]  ;;  %v949_v15 = vld [vmem:[#allocation3 + $0x194] sm:$0xf0]  ;;  %v706_v19 = vld [vmem:[#allocation3 + $0x80] sm:$0xf]  ;;  %v779_v24 = vor.u32 %v933_v13, %v778_v12  ;;  %v643_v33 = vor.u32 %v899_v17, %v642_v16 }
  0x20   :  { %486 = vmatpush.bf16.msra.mxu1 %v731_v57  ;;  %v915_v20 = vld [vmem:[#allocation3 + $0x84] sm:$0xf0]  ;;  %v770_v21 = vld [vmem:[#allocation3 + $0x100] sm:$0xf]  ;;  %v843_v28 = vor.u32 %v949_v15, %v842_v14  ;;  %v912_v30 = vld [vmem:[#allocation3 + $0x74] sm:$0xf] }
  0x21   :  { %499 = vmatpush.bf16.msra.mxu2 %v795_v58  ;;  %v931_v22 = vld [vmem:[#allocation3 + $0x104] sm:$0xf0]  ;;  %v834_v25 = vld [vmem:[#allocation3 + $0x180] sm:$0xf]  ;;  %v700_v31 = vld [vmem:[#allocation3 + $0x78] sm:$0xf0]  ;;  %v707_v37 = vor.u32 %v915_v20, %v706_v19 }
  0x22   :  { %512 = vmatpush.bf16.msra.mxu3 %v859_v62  ;;  %v1090_v26 = vld [vmem:[#allocation6] sm:$0xff]  ;;  %v1092_v27 = vld [vmem:[#allocation6 + $0x8] sm:$0xff]  ;;  %v928_v32 = vld [vmem:[#allocation3 + $0xf4] sm:$0xf]  ;;  %v771_v38 = vor.u32 %v931_v22, %v770_v21  ;;  %v703_v42 = vor.u32 %v912_v30, %v700_v31  ;;  %vm64_vm0 = vcmask 1043456   ;;  %s626_s27 = sshll.u32 %s1133_s3, 4  ;;  %s627_s27 = int_to_ptr.hbm [resolvable:$true] %s626_s27 }
  0x23   :  { %474 = vmatpush.bf16.msra.mxu0 %v659_v4  ;;  %v947_v29 = vld [vmem:[#allocation3 + $0x184] sm:$0xf0]  ;;  %53 = vst [vmem:[#allocation1] ss:$2 sm:$0xff] %v1090_v26  ;;  %v764_v34 = vld [vmem:[#allocation3 + $0xf8] sm:$0xf0]  ;;  %v50_v43 = vmax.f32 %v1090_v26, %v1092_v27 }
  0x24   :  { %487 = vmatpush.bf16.msra.mxu1 %v723_v6  ;;  %57 = vst [vmem:[#allocation1 + $0x10] ss:$2 sm:$0xff] %v1092_v27  ;;  %v944_v35 = vld [vmem:[#allocation3 + $0x174] sm:$0xf]  ;;  %v828_v36 = vld [vmem:[#allocation3 + $0x178] sm:$0xf0]  ;;  %v835_v41 = vor.u32 %v947_v29, %v834_v25  ;;  %v767_v46 = vor.u32 %v928_v32, %v764_v34 }
  0x25   :  { %500 = vmatpush.bf16.msra.mxu2 %v787_v7  ;;  %v960_v39 = vld [vmem:[#allocation3 + $0x1f4] sm:$0xf]  ;;  %v892_v40 = vld [vmem:[#allocation3 + $0x1f8] sm:$0xf0]  ;;  %v910_v44 = vld [vmem:[#allocation3 + $0x64] sm:$0xf]  ;;  %v831_v47 = vor.u32 %v944_v35, %v828_v36 }
  0x26   :  { %513 = vmatpush.bf16.msra.mxu3 %v851_v11  ;;  %v692_v45 = vld [vmem:[#allocation3 + $0x68] sm:$0xf0]  ;;  %v926_v48 = vld [vmem:[#allocation3 + $0xe4] sm:$0xf]  ;;  %v895_v51 = vor.u32 %v960_v39, %v892_v40  ;;  %v908_v57 = vld [vmem:[#allocation3 + $0x54] sm:$0xf] }
  0x27   :  { %475 = vmatpush.bf16.msra.mxu0 %v651_v18  ;;  %v756_v49 = vld [vmem:[#allocation3 + $0xe8] sm:$0xf0]  ;;  %v942_v50 = vld [vmem:[#allocation3 + $0x164] sm:$0xf]  ;;  %v684_v58 = vld [vmem:[#allocation3 + $0x58] sm:$0xf0]  ;;  %v695_v61 = vor.u32 %v910_v44, %v692_v45 }
  0x28   :  { %488 = vmatpush.bf16.msra.mxu1 %v715_v23  ;;  %v820_v52 = vld [vmem:[#allocation3 + $0x168] sm:$0xf0]  ;;  %v958_v53 = vld [vmem:[#allocation3 + $0x1e4] sm:$0xf]  ;;  %v759_v1 = vor.u32 %v926_v48, %v756_v49  ;;  %v924_v6 = vld [vmem:[#allocation3 + $0xd4] sm:$0xf]  ;;  %v687_v12 = vor.u32 %v908_v57, %v684_v58 }
  0x29   :  { %501 = vmatpush.bf16.msra.mxu2 %v779_v24  ;;  %v884_v54 = vld [vmem:[#allocation3 + $0x1e8] sm:$0xf0]  ;;  %v823_v2 = vor.u32 %v942_v50, %v820_v52  ;;  %v748_v7 = vld [vmem:[#allocation3 + $0xd8] sm:$0xf0]  ;;  %v940_v9 = vld [vmem:[#allocation3 + $0x154] sm:$0xf] }
  0x2a   :  { %514 = vmatpush.bf16.msra.mxu3 %v843_v28  ;;  %v54_v55 = vld.sshfl [vmem:[#allocation1] sm:$0xff pattern:$0x75316420]  ;;  %v55_v56 = vld.sshfl [vmem:[#allocation1 + $0x8] sm:$0xff pattern:$0x75316420]  ;;  %v887_v5 = vor.u32 %v958_v53, %v884_v54  ;;  %v751_v16 = vor.u32 %v924_v6, %v748_v7 }
  0x2b   :  { %476 = vmatpush.bf16.msra.mxu0 %v643_v33  ;;  %v58_v59 = vld.sshfl [vmem:[#allocation1 + $0x10] sm:$0xff pattern:$0x75316420]  ;;  %v65_v60 = vsel %vm64_vm0, %v54_v55, 0.0  ;;  %74 = vst [vmem:[#allocation1] ss:$2 sm:$0xff] %v50_v43 }
  0x2c   :  { %489 = vmatpush.bf16.msra.mxu1 %v707_v37  ;;  %v66_v62 = vsel %vm64_vm0, %v58_v59, 0.0  ;;  %v59_v63 = vld.sshfl [vmem:[#allocation1 + $0x18] sm:$0xff pattern:$0x75316420]  ;;  %v68_v0 = vsel %vm64_vm0, %v55_v56, 0.0 }
  0x2d   :  { %502 = vmatpush.bf16.msra.mxu2 %v771_v38  ;;  %v67_v3 = vadd.f32 %v66_v62, %v65_v60  ;;  %v69_v4 = vsel %vm64_vm0, %v59_v63, 0.0  ;;  %v812_v10 = vld [vmem:[#allocation3 + $0x158] sm:$0xf0]  ;;  %v956_v13 = vld [vmem:[#allocation3 + $0x1d4] sm:$0xf] }
  0x2e   :  { %515 = vmatpush.bf16.msra.mxu3 %v835_v41  ;;  %v70_v8 = vadd.f32 %v69_v4, %v68_v0  ;;  %v876_v14 = vld [vmem:[#allocation3 + $0x1d8] sm:$0xf0]  ;;  %v906_v17 = vld [vmem:[#allocation3 + $0x44] sm:$0xf]  ;;  %v676_v18 = vld [vmem:[#allocation3 + $0x48] sm:$0xf0]  ;;  %v815_v28 = vor.u32 %v940_v9, %v812_v10 }
  0x2f   :  { %521 = vmatpush.bf16.msrb.mxu0 %v703_v42  ;;  %v71_v11 = vmul.f32 0.5, %v67_v3  ;;  %v922_v20 = vld [vmem:[#allocation3 + $0xc4] sm:$0xf]  ;;  %v740_v21 = vld [vmem:[#allocation3 + $0xc8] sm:$0xf0]  ;;  %v879_v29 = vor.u32 %v956_v13, %v876_v14  ;;  %v679_v32 = vor.u32 %v906_v17, %v676_v18 }
  0x30   :  { %534 = vmatpush.bf16.msrb.mxu1 %v767_v46  ;;  %v72_v15 = vmul.f32 0.5, %v70_v8  ;;  %v938_v22 = vld [vmem:[#allocation3 + $0x144] sm:$0xf]  ;;  %v804_v33 = vld [vmem:[#allocation3 + $0x148] sm:$0xf0]  ;;  %v743_v36 = vor.u32 %v922_v20, %v740_v21 }
  0x31   :  { %547 = vmatpush.bf16.msrb.mxu2 %v831_v47  ;;  %v1102_v19 = vpack.c.bf16 %v71_v11, %v71_v11  ;;  %v954_v34 = vld [vmem:[#allocation3 + $0x1c4] sm:$0xf]  ;;  %v868_v35 = vld [vmem:[#allocation3 + $0x1c8] sm:$0xf0]  ;;  %v904_v37 = vld [vmem:[#allocation3 + $0x34] sm:$0xf]  ;;  %v807_v41 = vor.u32 %v938_v22, %v804_v33 }
  0x32   :  { %560 = vmatpush.bf16.msrb.mxu3 %v895_v51  ;;  %v75_v23 = vld.sshfl [vmem:[#allocation1] sm:$0xff pattern:$0x75316420]  ;;  %v1104_v24 = vpack.c.bf16 %v72_v15, %v72_v15  ;;  %v76_v25 = vld.sshfl [vmem:[#allocation1 + $0x8] sm:$0xff pattern:$0x75316420]  ;;  %v871_v42 = vor.u32 %v954_v34, %v868_v35 }
  0x33   :  { %522 = vmatpush.bf16.msrb.mxu0 %v695_v61  ;;  %503 = vmatmul.bf16.vlgmr.msra.gmra.mxu2 %v1102_v19  ;;  %v1107_v30 = vpack.c.bf16 %v75_v23, %v75_v23  ;;  %v1109_v31 = vpack.c.bf16 %v76_v25, %v76_v25  ;;  %v668_v38 = vld [vmem:[#allocation3 + $0x38] sm:$0xf0]  ;;  %v920_v39 = vld [vmem:[#allocation3 + $0xb4] sm:$0xf]  ;;  %v902_v49 = vld [vmem:[#allocation3 + $0x24] sm:$0xf]  ;;  %v148_v25 = vstv %s1130_s0 }
  0x34   :  { %535 = vmatpush.bf16.msrb.mxu1 %v759_v1  ;;  %516 = vmatmul.bf16.vlgmr.msra.gmra.mxu3 %v1104_v24  ;;  %v732_v40 = vld [vmem:[#allocation3 + $0xb8] sm:$0xf0]  ;;  %v936_v43 = vld [vmem:[#allocation3 + $0x134] sm:$0xf]  ;;  %v671_v44 = vor.u32 %v904_v37, %v668_v38  ;;  %v660_v50 = vld [vmem:[#allocation3 + $0x28] sm:$0xf0] }
  0x35   :  { %548 = vmatpush.bf16.msrb.mxu2 %v823_v2  ;;  %477 = vmatmul.bf16.vlgmr.msra.gmra.mxu0 %v1107_v30  ;;  %v796_v45 = vld [vmem:[#allocation3 + $0x138] sm:$0xf0]  ;;  %v952_v46 = vld [vmem:[#allocation3 + $0x1b4] sm:$0xf]  ;;  %v735_v48 = vor.u32 %v920_v39, %v732_v40  ;;  %v918_v51 = vld [vmem:[#allocation3 + $0xa4] sm:$0xf]  ;;  %v663_v56 = vor.u32 %v902_v49, %v660_v50 }
  0x36   :  { %561 = vmatpush.bf16.msrb.mxu3 %v887_v5  ;;  %490 = vmatmul.bf16.vlgmr.msra.gmra.mxu1 %v1109_v31  ;;  %v860_v47 = vld [vmem:[#allocation3 + $0x1b8] sm:$0xf0]  ;;  %v724_v52 = vld [vmem:[#allocation3 + $0xa8] sm:$0xf0]  ;;  %v799_v53 = vor.u32 %v936_v43, %v796_v45  ;;  %v934_v55 = vld [vmem:[#allocation3 + $0x124] sm:$0xf] }
  0x37   :  { %523 = vmatpush.bf16.msrb.mxu0 %v687_v12  ;;  %v863_v54 = vor.u32 %v952_v46, %v860_v47  ;;  %v788_v57 = vld [vmem:[#allocation3 + $0x128] sm:$0xf0]  ;;  %v950_v58 = vld [vmem:[#allocation3 + $0x1a4] sm:$0xf]  ;;  %v727_v60 = vor.u32 %v918_v51, %v724_v52  ;;  %v900_v61 = vld [vmem:[#allocation3 + $0x14] sm:$0xf] }
  0x38   :  { %536 = vmatpush.bf16.msrb.mxu1 %v751_v16  ;;  %v852_v59 = vld [vmem:[#allocation3 + $0x1a8] sm:$0xf0]  ;;  %v652_v62 = vld [vmem:[#allocation3 + $0x18] sm:$0xf0]  ;;  %v916_v63 = vld [vmem:[#allocation3 + $0x94] sm:$0xf]  ;;  %v791_v1 = vor.u32 %v934_v55, %v788_v57 }
  0x39   :  { %549 = vmatpush.bf16.msrb.mxu2 %v815_v28  ;;  %v716_v0 = vld [vmem:[#allocation3 + $0x98] sm:$0xf0]  ;;  %v855_v2 = vor.u32 %v950_v58, %v852_v59  ;;  %v932_v3 = vld [vmem:[#allocation3 + $0x114] sm:$0xf]  ;;  %v655_v4 = vor.u32 %v900_v61, %v652_v62  ;;  %v898_v9 = vld [vmem:[#allocation3 + $0x4] sm:$0xf] }
  0x3a   :  { %562 = vmatpush.bf16.msrb.mxu3 %v879_v29  ;;  %v780_v5 = vld [vmem:[#allocation3 + $0x118] sm:$0xf0]  ;;  %v948_v6 = vld [vmem:[#allocation3 + $0x194] sm:$0xf]  ;;  %v719_v8 = vor.u32 %v916_v63, %v716_v0  ;;  %v644_v10 = vld [vmem:[#allocation3 + $0x8] sm:$0xf0] }
  0x3b   :  { %524 = vmatpush.bf16.msrb.mxu0 %v679_v32  ;;  %v844_v7 = vld [vmem:[#allocation3 + $0x198] sm:$0xf0]  ;;  %v914_v11 = vld [vmem:[#allocation3 + $0x84] sm:$0xf]  ;;  %v708_v12 = vld [vmem:[#allocation3 + $0x88] sm:$0xf0]  ;;  %v783_v13 = vor.u32 %v932_v3, %v780_v5  ;;  %v647_v16 = vor.u32 %v898_v9, %v644_v10 }
  0x3c   :  { %537 = vmatpush.bf16.msrb.mxu1 %v743_v36  ;;  %v847_v14 = vor.u32 %v948_v6, %v844_v7  ;;  %v930_v15 = vld [vmem:[#allocation3 + $0x104] sm:$0xf]  ;;  %v772_v17 = vld [vmem:[#allocation3 + $0x108] sm:$0xf0]  ;;  %v711_v21 = vor.u32 %v914_v11, %v708_v12  ;;  %s1057_s0 = smov [#allocation8]  }
  0x3d   :  { %550 = vmatpush.bf16.msrb.mxu2 %v807_v41  ;;  %v946_v18 = vld [vmem:[#allocation3 + $0x184] sm:$0xf]  ;;  %v836_v20 = vld [vmem:[#allocation3 + $0x188] sm:$0xf0]  ;;  %v775_v22 = vor.u32 %v930_v15, %v772_v17  ;;  %s624_s24 = sshll.u32 %s1057_s0, 4  ;;  %s625_s24 = int_to_ptr.vmem [resolvable:$true] %s624_s24 }
  0x3e   :  { %563 = vmatpush.bf16.msrb.mxu3 %v871_v42  ;;  %v839_v23 = vor.u32 %v946_v18, %v836_v20 }
  0x3f   :  { %525 = vmatpush.bf16.msrb.mxu0 %v671_v44 }
  0x40   :  { %538 = vmatpush.bf16.msrb.mxu1 %v735_v48 }
  0x41   :  { %551 = vmatpush.bf16.msrb.mxu2 %v799_v53 }
  0x42   :  { %564 = vmatpush.bf16.msrb.mxu3 %v863_v54 }
  0x43   :  { %526 = vmatpush.bf16.msrb.mxu0 %v663_v56 }
  0x44   :  { %539 = vmatpush.bf16.msrb.mxu1 %v727_v60 }
  0x45   :  { %552 = vmatpush.bf16.msrb.mxu2 %v791_v1 }
  0x46   :  { %565 = vmatpush.bf16.msrb.mxu3 %v855_v2 }
  0x47   :  { %527 = vmatpush.bf16.msrb.mxu0 %v655_v4 }
  0x48   :  { %540 = vmatpush.bf16.msrb.mxu1 %v719_v8 }
  0x49   :  { %553 = vmatpush.bf16.msrb.mxu2 %v783_v13 }
  0x4a   :  { %566 = vmatpush.bf16.msrb.mxu3 %v847_v14 }
  0x4b   :  { %528 = vmatpush.bf16.msrb.mxu0 %v647_v16 }
  0x4c   :  { %541 = vmatpush.bf16.msrb.mxu1 %v711_v21 }
  0x4d   :  { %554 = vmatpush.bf16.msrb.mxu2 %v775_v22 }
  0x4e   :  { %567 = vmatpush.bf16.msrb.mxu3 %v839_v23  ;;  %529 = vmatmul.bf16.vlgmr.msrb.gmra.mxu0 %v1107_v30 }
  0x4f   :  { %542 = vmatmul.bf16.vlgmr.msrb.gmra.mxu1 %v1109_v31 }
  0x50   :  { %555 = vmatmul.bf16.vlgmr.msrb.gmra.mxu2 %v1102_v19 }
  0x51   :  { %568 = vmatmul.bf16.vlgmr.msrb.gmra.mxu3 %v1104_v24 }
  0xb2   :  { %v478_v28 = vpop.f32.mrf.mxu0 }
  0xb3   :  { %v491_v29 = vpop.f32.mrf.mxu1  ;;  %v479_v32 = vadd.f32 %v478_v28, %v148_v25 }
  0xb5   :  { %v492_v35 = vadd.f32 %v491_v29, %v479_v32 }
  0xb6   :  { %v504_v33 = vpop.f32.mrf.mxu2 }
  0xb7   :  { %v517_v34 = vpop.f32.mrf.mxu3  ;;  %v505_v38 = vadd.f32 %v504_v33, %v492_v35 }
  0xb9   :  { %v518_v31 = vadd.f32 %v517_v34, %v505_v38 }
  0xba   :  { %v480_v36 = vpop.f32.mrf.mxu0 }
  0xbb   :  { %v493_v37 = vpop.f32.mrf.mxu1  ;;  %v896_v40 = vmul.f32 -1.442695, %v518_v31 }
  0xbd   :  { %967 = vpow2.f32 %v896_v40 }
  0xbe   :  { %v506_v30 = vpop.f32.mrf.mxu2 }
  0xbf   :  { %v519_v39 = vpop.f32.mrf.mxu3 }
  0xc3   :  { %v968_v43 = vpop.eup %967 }
  0xc4   :  { %v579_v49 = vadd.f32 1.0, %v968_v43 }
  0xc6   :  { %969 = vrcp.f32 %v579_v49  ;;  %vm586_vm1 = vweird.f32 %v579_v49  ;;  %v592_v63 = vand.u32 2147483648, %v579_v49  ;;  %v590_v1 = vand.u32 2147483647, %v579_v49 }
  0xc8   :  { %v593_v7 = vor.u32 1.1754944e-38, %v592_v63  ;;  %vm591_vm7 = vcmp.eq.f32.partialorder %v590_v1, 8.507059e+37 }
  0xcb   :  { %v530_v19 = vpop.f32.mrf.mxu0 }
  0xcc   :  { %v543_v41 = vpop.f32.mrf.mxu1  ;;  %v531_v24 = vadd.f32 %v530_v19, %v148_v25  ;;  %v970_v54 = vpop.eup %969 }
  0xcd   :  { %v582_v57 = vmul.f32 %v970_v54, %v579_v49  ;;  %vm587_vm2 = vweird.f32 %v970_v54 }
  0xce   :  { %v544_v42 = vadd.f32 %v543_v41, %v531_v24  ;;  %vm588_vm4 = vmor %vm586_vm1, %vm587_vm2 }
  0xcf   :  { %v583_v58 = vsub.f32 1.0, %v582_v57 }
  0xd1   :  { %v584_v60 = vmul.f32 %v970_v54, %v583_v58 }
  0xd3   :  { %v556_v44 = vpop.f32.mrf.mxu2  ;;  %v532_v47 = vpop.f32.mrf.mxu0  ;;  %v585_v4 = vadd.f32 %v970_v54, %v584_v60 }
  0xd4   :  { %v569_v45 = vpop.f32.mrf.mxu3  ;;  %v557_v46 = vadd.f32 %v556_v44, %v544_v42  ;;  %v545_v48 = vpop.f32.mrf.mxu1 }
  0xd5   :  { %v589_v8 = vsel %vm588_vm4, %v970_v54, %v585_v4 }
  0xd6   :  { %v570_v50 = vadd.f32 %v569_v45, %v557_v46  ;;  %v594_v12 = vsel %vm591_vm7, %v593_v7, %v589_v8 }
  0xd8   :  { %v897_v51 = vmul.f32 -1.442695, %v570_v50 }
  0xda   :  { %971 = vpow2.f32 %v897_v51 }
  0xdb   :  { %v558_v52 = vpop.f32.mrf.mxu2 }
  0xdc   :  { %v571_v53 = vpop.f32.mrf.mxu3 }
  0xe0   :  { %v972_v55 = vpop.eup %971 }
  0xe1   :  { %v580_v56 = vadd.f32 1.0, %v972_v55 }
  0xe3   :  { %973 = vrcp.f32 %v580_v56  ;;  %v607_v0 = vand.u32 2147483648, %v580_v56  ;;  %v605_v3 = vand.u32 2147483647, %v580_v56  ;;  %vm601_vm5 = vweird.f32 %v580_v56 }
  0xe5   :  { %v608_v6 = vor.u32 1.1754944e-38, %v607_v0  ;;  %vm606_vm8 = vcmp.eq.f32.partialorder %v605_v3, 8.507059e+37 }
  0xe9   :  { %v974_v59 = vpop.eup %973 }
  0xea   :  { %v597_v61 = vmul.f32 %v974_v59, %v580_v56  ;;  %vm602_vm3 = vweird.f32 %v974_v59 }
  0xeb   :  { %vm603_vm6 = vmor %vm601_vm5, %vm602_vm3 }
  0xec   :  { %v598_v62 = vsub.f32 1.0, %v597_v61 }
  0xee   :  { %v599_v2 = vmul.f32 %v974_v59, %v598_v62 }
  0xf0   :  { %v600_v5 = vadd.f32 %v974_v59, %v599_v2 }
  0xf2   :  { %v604_v9 = vsel %vm603_vm6, %v974_v59, %v600_v5 }
  0xf3   :  { %v609_v10 = vsel %vm606_vm8, %v608_v6, %v604_v9 }
  0xf4   :  { %v613_v11 = vrot.slane %v609_v10, 4 }
  0xf6   :  { %v614_v13 = vsel %vm64_vm0, %v594_v12, %v613_v11 }
  0xf7   :  { %v616_v14 = vmul.f32 %v614_v13, %v1090_v26  ;;  %v617_v15 = vmul.f32 %v614_v13, %v1092_v27 }
  0xf9   :  { %618 = vst [vmem:[#allocation8] sm:$0xff] %v616_v14 }
  0xfa   :  { %619 = vst [vmem:[#allocation8 + $0x8] sm:$0xff] %v617_v15 }
  0xfb   :  { %632 = dma.vmem_to_hbm [thread:$0]  %s625_s24, 256, %s627_s27, [#allocation5], %s1054_s20, %s1054_s20, %s1055_s21  }
  0xfc   :  { %1051 = dma.done.wait [#allocation5], 256  }
  0xfd   :  { %1052 = vsyncadd [#allocation5], 4294967040 }
  0xfe   :  { %637 = vsyncpa [#allocation4], 1 }
  0xff   :  { %638 = vsyncpa [#allocation7], 1 }
 0x100   :  { %639 = vsyncpa [#allocation5], 1 }

</bundles_post_ra>
